<compile_context>
chip_gen: v6e
topology: v6e:2x2x1
jax: 0.10.0
libtpu: 0.0.40
codegen_flags: <defaults>
</compile_context>

<pallas_src>
import functools
import math

import jax
import jax.numpy as jnp
from jax.experimental import pallas as pl
from jax.experimental.pallas import tpu as pltpu


# ---------------------------------------------------------------------------
# In-kernel helpers
# ---------------------------------------------------------------------------
def _layer_norm(x, g, b, eps):
    # x: (rows, D) f32, g/b: (1, D) f32.  PyTorch LayerNorm uses biased var.
    mu = jnp.mean(x, axis=-1, keepdims=True)
    var = jnp.mean((x - mu) ** 2, axis=-1, keepdims=True)
    return (x - mu) * jax.lax.rsqrt(var + eps) * g + b


def _gelu_new(x):
    # GPT-2 "gelu_new" activation (tanh approximation).
    c = math.sqrt(2.0 / math.pi)
    return 0.5 * x * (1.0 + jnp.tanh(c * (x + 0.044715 * x * x * x)))


def _seq_tile(S):
    for t in (256, 128):
        if S % t == 0:
            return t
    return S


# ---------------------------------------------------------------------------
# Kernel A: LayerNorm-1 + packed QKV projection.
#   grid = (batch, seq_tile), both parallel.
# ---------------------------------------------------------------------------
def _qkv_kernel(x_ref, ln1g_ref, ln1b_ref, wqkv_ref, bqkv_ref, qkv_ref, *, eps):
    x = x_ref[0].astype(jnp.float32)                       # (ts, D)
    h = _layer_norm(x, ln1g_ref[...], ln1b_ref[...], eps)
    # bf16 MXU matmul, f32 accumulation; bias added once per tile.
    y = jnp.dot(h.astype(jnp.bfloat16), wqkv_ref[...],
                preferred_element_type=jnp.float32)
    y = y + bqkv_ref[...]                                  # (ts, 3D)
    qkv_ref[0] = y.astype(qkv_ref.dtype)


# ---------------------------------------------------------------------------
# Kernel B: query-tiled causal attention + output projection + residual +
#           LayerNorm-2 + MLP (gelu_new) + residual (+ optional fused ln_f).
#   grid = (batch, q_tile), both parallel.
#   q/k/v arrive head-major: (B, H, S, dh).
# ---------------------------------------------------------------------------
def _attn_mlp_kernel(x_ref, q_ref, k_ref, v_ref, maskb_ref,
                     waproj_ref, baproj_ref,
                     ln2g_ref, ln2b_ref,
                     wfc_ref, bfc_ref,
                     wmproj_ref, bmproj_ref,
                     lnfg_ref, lnfb_ref,
                     out_ref, *, eps, apply_final_ln):
    x = x_ref[0].astype(jnp.float32)                       # (tq, D) residual
    q = q_ref[0]                                           # (H, tq, dh) bf16
    k = k_ref[0]                                           # (H, S,  dh) bf16
    v = v_ref[0]                                           # (H, S,  dh) bf16
    mask_bias = maskb_ref[0]                               # (1, S)  f32

    tq = q.shape[1]
    S = k.shape[1]
    dh = q.shape[2]
    scale = 1.0 / math.sqrt(dh)

    # ---- attention scores: one leading-batch einsum over heads ----
    scores = jnp.einsum('hqd,hkd->hqk', q, k,
                        preferred_element_type=jnp.float32) * scale  # (H,tq,S)

    # Causal mask (offset by the query-tile start) + additive key mask.
    q_start = pl.program_id(1) * tq
    row = jax.lax.broadcasted_iota(jnp.int32, (tq, S), 0) + q_start
    col = jax.lax.broadcasted_iota(jnp.int32, (tq, S), 1)
    causal = (col <= row)[None, :, :]                      # (1, tq, S)
    scores = jnp.where(causal, scores, jnp.float32(-1e4))
    scores = scores + mask_bias[None, :, :]

    # Softmax (max-subtracted, f32); reciprocal on the EUP instead of a divide.
    scores = scores - jnp.max(scores, axis=-1, keepdims=True)
    probs = jnp.exp(scores)
    denom = jnp.sum(probs, axis=-1, keepdims=True)
    probs = probs * pl.reciprocal(denom, approx=True)

    # Context: batched (over heads) PV matmul, bf16 MXU / f32 accumulate.
    ctx = jnp.einsum('hqk,hkd->hqd', probs.astype(v.dtype), v,
                     preferred_element_type=jnp.float32)   # (H, tq, dh)

    # Output projection with head-major weight (H, dh, D):
    # attn_out[q, o] = sum_h sum_d ctx[h, q, d] * W[h, d, o]
    per_head = jnp.einsum('hqd,hdo->hqo', ctx.astype(jnp.bfloat16),
                          waproj_ref[...],
                          preferred_element_type=jnp.float32)  # (H, tq, D)
    attn_out = jnp.sum(per_head, axis=0) + baproj_ref[...]     # (tq, D)

    x = x + attn_out                                           # residual 1

    # ---- MLP ----
    h2 = _layer_norm(x, ln2g_ref[...], ln2b_ref[...], eps)
    ff = jnp.dot(h2.astype(jnp.bfloat16), wfc_ref[...],
                 preferred_element_type=jnp.float32) + bfc_ref[...]
    ff = _gelu_new(ff)
    mlp_out = jnp.dot(ff.astype(jnp.bfloat16), wmproj_ref[...],
                      preferred_element_type=jnp.float32) + bmproj_ref[...]
    x = x + mlp_out                                            # residual 2

    if apply_final_ln:                                         # fused ln_f
        x = _layer_norm(x, lnfg_ref[...], lnfb_ref[...], eps)

    out_ref[0] = x.astype(out_ref.dtype)


# ---------------------------------------------------------------------------
# One GPT2Block (two pallas_calls + one XLA head-major relayout)
# ---------------------------------------------------------------------------
def gpt2_block_pallas(hidden, mask_bias, lp, lnf, *, n_head, eps, apply_final_ln):
    B, S, D = hidden.shape
    dh = D // n_head
    ts = _seq_tile(S)

    cparams = pltpu.CompilerParams(
        dimension_semantics=("parallel", "parallel"),
        vmem_limit_bytes=64 * 1024 * 1024)

    # ---- kernel A: LN1 + QKV projection ----
    qkv = pl.pallas_call(
        functools.partial(_qkv_kernel, eps=eps),
        out_shape=jax.ShapeDtypeStruct((B, S, 3 * D), jnp.bfloat16),
        grid=(B, S // ts),
        in_specs=[
            pl.BlockSpec((1, ts, D), lambda b, i: (b, i, 0)),      # x tile
            pl.BlockSpec((1, D), lambda b, i: (0, 0)),             # ln1 gamma
            pl.BlockSpec((1, D), lambda b, i: (0, 0)),             # ln1 beta
            pl.BlockSpec((D, 3 * D), lambda b, i: (0, 0)),         # w_qkv
            pl.BlockSpec((1, 3 * D), lambda b, i: (0, 0)),         # b_qkv
        ],
        out_specs=pl.BlockSpec((1, ts, 3 * D), lambda b, i: (b, i, 0)),
        compiler_params=cparams,
    )(hidden, lp["ln1_g"], lp["ln1_b"], lp["w_qkv"], lp["b_qkv"])

    # ---- head-major relayout (XLA glue, done once per layer) ----
    # (B, S, 3D) -> (3, B, H, S, dh); kernels then only see leading-batch einsums.
    qkv5 = qkv.reshape(B, S, 3, n_head, dh).transpose(2, 0, 3, 1, 4)
    q, k, v = qkv5[0], qkv5[1], qkv5[2]

    # ---- kernel B: attention + projection + MLP (+ fused ln_f) ----
    lnf_g, lnf_b = lnf
    kern = functools.partial(_attn_mlp_kernel, eps=eps,
                             apply_final_ln=apply_final_ln)
    return pl.pallas_call(
        kern,
        out_shape=jax.ShapeDtypeStruct((B, S, D), jnp.bfloat16),
        grid=(B, S // ts),
        in_specs=[
            pl.BlockSpec((1, ts, D), lambda b, i: (b, i, 0)),              # residual x
            pl.BlockSpec((1, n_head, ts, dh), lambda b, i: (b, 0, i, 0)),  # q tile
            pl.BlockSpec((1, n_head, S, dh), lambda b, i: (b, 0, 0, 0)),   # k (full)
            pl.BlockSpec((1, n_head, S, dh), lambda b, i: (b, 0, 0, 0)),   # v (full)
            pl.BlockSpec((1, 1, S), lambda b, i: (b, 0, 0)),               # key mask bias
            pl.BlockSpec((n_head, dh, D), lambda b, i: (0, 0, 0)),         # w_aproj (H,dh,D)
            pl.BlockSpec((1, D), lambda b, i: (0, 0)),                     # b_aproj
            pl.BlockSpec((1, D), lambda b, i: (0, 0)),                     # ln2 gamma
            pl.BlockSpec((1, D), lambda b, i: (0, 0)),                     # ln2 beta
            pl.BlockSpec((D, 4 * D), lambda b, i: (0, 0)),                 # w_fc
            pl.BlockSpec((1, 4 * D), lambda b, i: (0, 0)),                 # b_fc
            pl.BlockSpec((4 * D, D), lambda b, i: (0, 0)),                 # w_mproj
            pl.BlockSpec((1, D), lambda b, i: (0, 0)),                     # b_mproj
            pl.BlockSpec((1, D), lambda b, i: (0, 0)),                     # ln_f gamma
            pl.BlockSpec((1, D), lambda b, i: (0, 0)),                     # ln_f beta
        ],
        out_specs=pl.BlockSpec((1, ts, D), lambda b, i: (b, i, 0)),
        compiler_params=cparams,
    )(hidden, q, k, v, mask_bias,
      lp["w_aproj3"], lp["b_aproj"], lp["ln2_g"], lp["ln2_b"],
      lp["w_fc"], lp["b_fc"], lp["w_mproj"], lp["b_mproj"],
      lnf_g, lnf_b)


# ---------------------------------------------------------------------------
# Full GPT2Stack forward
# ---------------------------------------------------------------------------
def gpt2_stack_forward(params, config, input_ids,
                       attention_mask=None, position_ids=None):
    B, S = input_ids.shape
    if position_ids is None:
        position_ids = jnp.arange(S, dtype=jnp.int32)[None, :]     # (1, S)

    # Embedding gathers: vocab-sized gather has no clean Pallas tile
    # equivalent, so it stays in XLA.  # TODO(synk): Pallas DMA-gather for wte.
    inputs_embeds = jnp.take(params["wte"], input_ids, axis=0)      # (B, S, D)
    position_embeds = jnp.take(params["wpe"], position_ids, axis=0)  # (1, S, D)
    hidden = (inputs_embeds + position_embeds).astype(jnp.bfloat16)
    # drop (embd_pdrop) is identity in eval mode.

    if attention_mask is not None:
        mask_bias = (1.0 - attention_mask.astype(jnp.float32)) * -10000.0
        mask_bias = mask_bias[:, None, :]                           # (B, 1, S)
    else:
        mask_bias = jnp.zeros((B, 1, S), jnp.float32)

    n_layer = len(params["blocks"])
    lnf = (params["ln_f_g"], params["ln_f_b"])
    for li, lp in enumerate(params["blocks"]):
        hidden = gpt2_block_pallas(
            hidden, mask_bias, lp, lnf,
            n_head=config["n_head"],
            eps=config["layer_norm_epsilon"],
            apply_final_ln=(li == n_layer - 1))   # ln_f fused into last block
    return hidden


# ---------------------------------------------------------------------------
# Deterministic parameter construction (bf16 weights, f32 norms/biases)
# ---------------------------------------------------------------------------
def make_params(key, config):
    V, P, D = config["vocab_size"], config["n_positions"], config["n_embd"]
    H = config["n_head"]
    dh = D // H
    std = config["initializer_range"]

    def nrm(k, shape):
        return (jax.random.normal(k, shape, jnp.float32) * std).astype(jnp.bfloat16)

    keys = jax.random.split(key, 2 + 4 * config["n_layer"])
    params = {
        "wte": nrm(keys[0], (V, D)),
        "wpe": nrm(keys[1], (P, D)),
        "ln_f_g": jnp.ones((1, D), jnp.float32),
        "ln_f_b": jnp.zeros((1, D), jnp.float32),
        "blocks": [],
    }
    kidx = 2
    for _ in range(config["n_layer"]):
        lp = {
            "ln1_g": jnp.ones((1, D), jnp.float32),
            "ln1_b": jnp.zeros((1, D), jnp.float32),
            "w_qkv": nrm(keys[kidx + 0], (D, 3 * D)),
            "b_qkv": jnp.zeros((1, 3 * D), jnp.float32),
            # Output projection stored head-major (H, dh, D): row h*dh+d -> (h, d).
            "w_aproj3": nrm(keys[kidx + 1], (D, D)).reshape(H, dh, D),
            "b_aproj": jnp.zeros((1, D), jnp.float32),
            "ln2_g": jnp.ones((1, D), jnp.float32),
            "ln2_b": jnp.zeros((1, D), jnp.float32),
            "w_fc": nrm(keys[kidx + 2], (D, 4 * D)),
            "b_fc": jnp.zeros((1, 4 * D), jnp.float32),
            "w_mproj": nrm(keys[kidx + 3], (4 * D, D)),
            "b_mproj": jnp.zeros((1, D), jnp.float32),
        }
        kidx += 4
        params["blocks"].append(lp)
    return params


if __name__ == "__main__":
    config = {
        "vocab_size": 50,
        "n_positions": 16,
        "n_ctx": 16,
        "n_embd": 32,
        "n_layer": 2,
        "n_head": 4,
        "layer_norm_epsilon": 1e-5,
        "initializer_range": 0.02,
    }
    # NOTE: toy shapes for the smoke test; for benchmarking use D, S that are
    # multiples of 128 (real GPT-2: D=768, S>=128) so stores are lane-dense.

    root = jax.random.PRNGKey(0)
    pkey, ikey = jax.random.split(root)
    params = make_params(pkey, config)

    B, S = 2, 8
    input_ids = jax.random.randint(ikey, (B, S), 0, config["vocab_size"],
                                   dtype=jnp.int32)
    attention_mask = jnp.ones((B, S), jnp.float32)

    out = gpt2_stack_forward(params, config, input_ids,
                             attention_mask=attention_mask)
    out = jax.block_until_ready(out)
    assert out.shape == (B, S, config["n_embd"])
    assert jnp.all(jnp.isfinite(out.astype(jnp.float32)))
    print("KERNEL_OK")
</pallas_src>

<mosaic_0001>
module attributes {stable_mosaic.version = 11 : i64} {
  func.func @_qkv_kernel(%arg0: i32, %arg1: i32, %arg2: memref<1x8x32xbf16, #tpu.memory_space<vmem>>, %arg3: memref<1x32xf32, #tpu.memory_space<vmem>>, %arg4: memref<1x32xf32, #tpu.memory_space<vmem>>, %arg5: memref<32x96xbf16, #tpu.memory_space<vmem>>, %arg6: memref<1x96xf32, #tpu.memory_space<vmem>>, %arg7: memref<1x8x96xbf16, #tpu.memory_space<vmem>>) attributes {dimension_semantics = [#tpu.dimension_semantics<parallel>, #tpu.dimension_semantics<parallel>], iteration_bounds = array<i64: 2, 1>, scalar_prefetch = 0 : i64, scratch_operands = 0 : i64, tpu.core_type = #tpu.core_type<tc>, window_params = [{transform_indices = @transform_0, window_bounds = array<i64: 1, 8, 32>}, {pipeline_mode = #tpu.pipeline_mode<synchronous>, transform_indices = @transform_1, window_bounds = array<i64: 1, 32>}, {pipeline_mode = #tpu.pipeline_mode<synchronous>, transform_indices = @transform_2, window_bounds = array<i64: 1, 32>}, {pipeline_mode = #tpu.pipeline_mode<synchronous>, transform_indices = @transform_3, window_bounds = array<i64: 32, 96>}, {pipeline_mode = #tpu.pipeline_mode<synchronous>, transform_indices = @transform_4, window_bounds = array<i64: 1, 96>}, {transform_indices = @transform_5, window_bounds = array<i64: 1, 8, 96>}]} {
    %c0 = arith.constant 0 : index
    %c0_0 = arith.constant 0 : index
    %c0_1 = arith.constant 0 : index
    %0 = vector.load %arg2[%c0, %c0_0, %c0_1] : memref<1x8x32xbf16, #tpu.memory_space<vmem>>, vector<1x8x32xbf16>
    %1 = vector.shape_cast %0 : vector<1x8x32xbf16> to vector<8x32xbf16>
    %2 = arith.extf %1 : vector<8x32xbf16> to vector<8x32xf32>
    %c0_2 = arith.constant 0 : index
    %c0_3 = arith.constant 0 : index
    %3 = vector.load %arg3[%c0_2, %c0_3] : memref<1x32xf32, #tpu.memory_space<vmem>>, vector<1x32xf32>
    %c0_4 = arith.constant 0 : index
    %c0_5 = arith.constant 0 : index
    %4 = vector.load %arg4[%c0_4, %c0_5] : memref<1x32xf32, #tpu.memory_space<vmem>>, vector<1x32xf32>
    %cst = arith.constant dense<0.000000e+00> : vector<8xf32>
    %5 = vector.multi_reduction <add>, %2, %cst [1] : vector<8x32xf32> to vector<8xf32>
    %6 = vector.shape_cast %5 : vector<8xf32> to vector<8x1xf32>
    %cst_6 = arith.constant 3.200000e+01 : f32
    %7 = vector.broadcast %cst_6 : f32 to vector<8x1xf32>
    %8 = arith.divf %6, %7 : vector<8x1xf32>
    %9 = vector.broadcast %8 : vector<8x1xf32> to vector<8x32xf32>
    %10 = arith.subf %2, %9 : vector<8x32xf32>
    %11 = arith.mulf %10, %10 : vector<8x32xf32>
    %cst_7 = arith.constant dense<0.000000e+00> : vector<8xf32>
    %12 = vector.multi_reduction <add>, %11, %cst_7 [1] : vector<8x32xf32> to vector<8xf32>
    %13 = vector.shape_cast %12 : vector<8xf32> to vector<8x1xf32>
    %cst_8 = arith.constant 3.200000e+01 : f32
    %14 = vector.broadcast %cst_8 : f32 to vector<8x1xf32>
    %15 = arith.divf %13, %14 : vector<8x1xf32>
    %16 = vector.broadcast %8 : vector<8x1xf32> to vector<8x32xf32>
    %17 = arith.subf %2, %16 : vector<8x32xf32>
    %cst_9 = arith.constant 9.99999974E-6 : f32
    %18 = vector.broadcast %cst_9 : f32 to vector<8x1xf32>
    %19 = arith.addf %15, %18 : vector<8x1xf32>
    %20 = math.rsqrt %19 : vector<8x1xf32>
    %21 = vector.broadcast %20 : vector<8x1xf32> to vector<8x32xf32>
    %22 = arith.mulf %17, %21 : vector<8x32xf32>
    %23 = vector.broadcast %3 : vector<1x32xf32> to vector<8x32xf32>
    %24 = arith.mulf %22, %23 : vector<8x32xf32>
    %25 = vector.broadcast %4 : vector<1x32xf32> to vector<8x32xf32>
    %26 = arith.addf %24, %25 : vector<8x32xf32>
    %27 = arith.truncf %26 : vector<8x32xf32> to vector<8x32xbf16>
    %c0_10 = arith.constant 0 : index
    %c0_11 = arith.constant 0 : index
    %28 = vector.load %arg5[%c0_10, %c0_11] : memref<32x96xbf16, #tpu.memory_space<vmem>>, vector<32x96xbf16>
    %cst_12 = arith.constant dense<0.000000e+00> : vector<8x96xf32>
    %29 = tpu.matmul %27, %28, %cst_12 {dimension_numbers = #tpu.dot_dimension_numbers<[1], [0], [0], [1], [0, 0, 1, 1], [], []>} : vector<8x32xbf16>, vector<32x96xbf16>, vector<8x96xf32> -> vector<8x96xf32>
    %c0_13 = arith.constant 0 : index
    %c0_14 = arith.constant 0 : index
    %30 = vector.load %arg6[%c0_13, %c0_14] : memref<1x96xf32, #tpu.memory_space<vmem>>, vector<1x96xf32>
    %31 = vector.broadcast %30 : vector<1x96xf32> to vector<8x96xf32>
    %32 = arith.addf %29, %31 : vector<8x96xf32>
    %33 = arith.truncf %32 : vector<8x96xf32> to vector<8x96xbf16>
    %c0_15 = arith.constant 0 : index
    %c0_16 = arith.constant 0 : index
    %c0_17 = arith.constant 0 : index
    %34 = vector.load %arg7[%c0_15, %c0_16, %c0_17] : memref<1x8x96xbf16, #tpu.memory_space<vmem>>, vector<1x8x96xbf16>
    %35 = vector.shape_cast %34 : vector<1x8x96xbf16> to vector<8x96xbf16>
    %36 = vector.shape_cast %33 : vector<8x96xbf16> to vector<1x8x96xbf16>
    tpu.vector_store %arg7[%c0_15, %c0_16, %c0_17], %36 {strides = array<i32>} : memref<1x8x96xbf16, #tpu.memory_space<vmem>>, vector<1x8x96xbf16>,
    return
  }
  func.func @transform_0(%arg0: i32, %arg1: i32) -> (i32, i32, i32) {
    %c0_i32 = arith.constant 0 : i32
    %c0_i32_0 = arith.constant 0 : i32
    return %arg0, %arg1, %c0_i32 : i32, i32, i32
  }
  func.func @transform_1(%arg0: i32, %arg1: i32) -> (i32, i32) {
    %c0_i32 = arith.constant 0 : i32
    %c0_i32_0 = arith.constant 0 : i32
    %c0_i32_1 = arith.constant 0 : i32
    return %c0_i32, %c0_i32_0 : i32, i32
  }
  func.func @transform_2(%arg0: i32, %arg1: i32) -> (i32, i32) {
    %c0_i32 = arith.constant 0 : i32
    %c0_i32_0 = arith.constant 0 : i32
    %c0_i32_1 = arith.constant 0 : i32
    return %c0_i32, %c0_i32_0 : i32, i32
  }
  func.func @transform_3(%arg0: i32, %arg1: i32) -> (i32, i32) {
    %c0_i32 = arith.constant 0 : i32
    %c0_i32_0 = arith.constant 0 : i32
    %c0_i32_1 = arith.constant 0 : i32
    return %c0_i32, %c0_i32_0 : i32, i32
  }
  func.func @transform_4(%arg0: i32, %arg1: i32) -> (i32, i32) {
    %c0_i32 = arith.constant 0 : i32
    %c0_i32_0 = arith.constant 0 : i32
    %c0_i32_1 = arith.constant 0 : i32
    return %c0_i32, %c0_i32_0 : i32, i32
  }
  func.func @transform_5(%arg0: i32, %arg1: i32) -> (i32, i32, i32) {
    %c0_i32 = arith.constant 0 : i32
    %c0_i32_0 = arith.constant 0 : i32
    return %arg0, %arg1, %c0_i32 : i32, i32, i32
  }
}

</mosaic_0001>

<bundles_post_ra>
// kernel: tpu_custom_call.1
= control target key start
LH: loop header
LB: loop body
LE: loop exit
PB: predicated region body
PF: predicated region fallthrough
CT: control target
= control target key end

     0   :  { %s966_s0 = inlined_call_operand.hbm [shape: bf16[2,8,32], index: 0, kind: input, shape index: {}]   ;;  %s967_s1 = inlined_call_operand.vmem [shape: f32[1,32], index: 1, kind: input, shape index: {}]   ;;  %s968_s2 = inlined_call_operand.vmem [shape: f32[1,32], index: 2, kind: input, shape index: {}]   ;;  %s969_s3 = inlined_call_operand.hbm [shape: bf16[32,96], index: 3, kind: input, shape index: {}]   ;;  %s970_s4 = inlined_call_operand.vmem [shape: f32[1,96], index: 4, kind: input, shape index: {}]   ;;  %s971_s5 = inlined_call_operand.hbm [shape: bf16[2,8,96], index: 5, kind: output, shape index: {}]  }
   0x1   :  { %974 = sst [smem:[#allocation12_spill]] %s969_s3 }
   0x2   :  { %10 = vsyncpa [#allocation3], 0 }
   0x3   :  { %12 = vsyncpa [#allocation3 + $0x1], 0 }
   0x4   :  { %13 = vsyncpa [#allocation6], 0 }
   0x5   :  { %14 = vsyncpa [#allocation4], 0 }
   0x6   :  { %16 = vsyncpa [#allocation4 + $0x1], 0  ;;  %s771_s18 = smov 0   ;;  %s773_s19 = smov 0  }
   0x7   :  { %s775_s20 = smov 0   ;;  %s777_s21 = smov 0  }
   0x8   :  { %s779_s22 = smov 0   ;;  %s781_s23 = smov 0  }
   0x9 LB: > { %s481_s24 = sadd.s32 4294967295, %s732_s23   ;;  %s482_s25 = sadd.s32 4294967294, %s732_s23   ;;  %s732_s23 = sphi %s781_s23, %s22_s23   ;;  %s728_s22 = sphi %s779_s22, %s994_s22   ;;  %s724_s21 = sphi %s777_s21, %s993_s21   ;;  %s720_s20 = sphi %s775_s20, %s992_s20   ;;  %s716_s19 = sphi %s773_s19, %s991_s19   ;;  %s712_s18 = sphi %s771_s18, %s990_s18  }
   0xa   : > { %p56_p0 = scmp.ne.s32.totalorder %s716_s19, %s712_s18  ;;  %p805_p1 = scmp.eq.s32.totalorder %s481_s24, 0 }
   0xb   : > { %p809_p2 = scmp.eq.s32.totalorder %s481_s24, 1  ;;  %p172_p3 = scmp.eq.s32.totalorder %s482_s25, 1 }
   0xc   : > { %p815_p4 = por %p805_p1, %p56_p0  ;;  %p483_p5 = scmp.ge.s32.totalorder %s732_s23, 1 }
   0xd   : > { %p820_p6 = por %p172_p3, %p56_p0  ;;  %p179_p7 = scmp.lt.s32.totalorder %s732_s23, 3 }
   0xe   : > { %s977_s28 = scalar_select %p815_p4, 1, 0 }
   0xf   : > { %s978_s29 = scalar_select %p820_p6, 1, 0 }
  0x10   : > { %p825_p8 = pnand %p483_p5, %p179_p7  ;;  %s734_s6 = smov [#allocation5]  }
  0x11   : > { %s197_s7 = sshll.u32 %s734_s6, 4  ;;  %s34_s9 = sadd.s32 1, %s728_s22  ;;  %s198_s7 = int_to_ptr.vmem [resolvable:$true] %s197_s7 }
  0x12   : > { %p521_p9 = pneg %p825_p8  ;;  %s605_s10 = scalar_lea.vmem %s198_s7, 256 }
  0x13   : > { %p606_p13 = scmp.ne.s32.totalorder %s198_s7, %s605_s10  ;;  %p613_p5 = scmp.lt.s32.totalorder %s198_s7, %s198_s7 }
  0x14   : > { %p834_p11 = pnand %p521_p9, %p805_p1  ;;  %p614_p7 = scmp.lt.s32.totalorder %s605_s10, %s605_s10 }
  0x16   : > { %p596_p12 = pneg %p834_p11  ;;  %p615_p6 = por %p614_p7, %p613_p5 }
  0x18   : > { %p608_p0 = pnand %p606_p13, %p596_p12 }
  0x1a   : > { %p609_p3 = pneg %p608_p0 }
  0x1c   : > { %p616_p4 = pnand %p615_p6, %p609_p3 }
  0x1e   : > { %619 = shalt.err (!%p616_p4)
}
  0x1f   : > { %s735_s11 = smov 64   ;;  %s736_s12 = smov 4  }
  0x20   : > { %s981_s3 = sld [smem:[#allocation12_spill]]  ;;  %p36_p6 = scmp.ge.s32.totalorder %s34_s9, 2 }
  0x21   : > { %s43_s15 = sadd.s32 1, %s720_s20  ;;  %p50_p4 = scmp.ne.s32.totalorder %s720_s20, %s716_s19 }
  0x22   : > { %p51_p9 = scmp.eq.s32.totalorder %s732_s23, 0  ;;  %s996_s9 = smov (%p36_p6, %s34_s9), 0 }
  0x23   : > { %982 = sst [smem:[#allocation11_spill]] %s996_s9  ;;  %p858_p13 = por %p809_p2, %p50_p4 }
  0x24   : > { %p852_p12 = por %p51_p9, %p50_p4  ;;  %s38_s24 = ssub.s32 %s728_s22, %s996_s9 }
  0x25   : > { %p534_p0 = scmp.lt.s32.totalorder %s732_s23, 2  ;;  %s214_s25 = sand.u32 1, %s720_s20  }
  0x26   : > { %524 = dma.hbm_to_vmem [thread:$0]  (!%p834_p11), %s981_s3, 256, %s198_s7, [#allocation6], %s735_s11, %s735_s11, %s736_s12  }
  0x27   : > { %p41_p11 = scmp.eq.s32.totalorder %s38_s24, 0  ;;  %s486_s6 = sshll.u32 %s214_s25, 2 }
  0x28   : > { %s487_s8 = sshll.u32 %s728_s22, 6  ;;  %s218_s13 = scalar_lea.vmem [#allocation2], %s486_s6 }
  0x29   : > { %s867_s7 = scalar_select %p41_p11, %s720_s20, %s43_s15  }
  0x2a   : > { %s224_s12 = scalar_lea.hbm %s966_s0, %s487_s8  ;;  %s226_s14 = sshll.u32 %s218_s13, 4  ;;  %s227_s14 = int_to_ptr.vmem [resolvable:$true] %s226_s14 }
  0x2b   : > { %p875_p2 = pnand %p534_p0, %p852_p12  ;;  %s215_s3 = scalar_lea.sflag [#allocation3], %s214_s25 }
  0x2c   : > { %s633_s24 = scalar_lea.vmem %s227_s14, 64  ;;  %s737_s15 = smov [#allocation2]  }
  0x2d   : > { %p622_p3 = pneg %p875_p2  ;;  %p634_p5 = scmp.ne.s32.totalorder %s227_s14, %s633_s24 }
  0x2e   : > { %s638_s9 = sshll.u32 %s737_s15, 4  ;;  %s639_s9 = int_to_ptr.vmem [resolvable:$false] %s638_s9 }
  0x2f   : > { %p636_p7 = pnand %p634_p5, %p622_p3  ;;  %s640_s8 = scalar_lea.vmem %s639_s9, 128 }
  0x30   : > { %p641_p4 = scmp.lt.s32.totalorder %s227_s14, %s639_s9  ;;  %p642_p9 = scmp.lt.s32.totalorder %s640_s8, %s633_s24 }
  0x31   : > { %p637_p6 = pneg %p636_p7 }
  0x32   : > { %p643_p11 = por %p642_p9, %p641_p4 }
  0x34   : > { %p644_p10 = pnand %p643_p11, %p637_p6 }
  0x36   : > { %647 = shalt.err (!%p644_p10)
}
  0x37   : > { %528 = dma.hbm_to_vmem [thread:$0]  (!%p875_p2), %s224_s12, 64, %s227_s14, %s215_s3  }
  0x38   : > { %235 = sbr.rel (%p825_p8) target bundleno = 588 (0x24c), region = 40  ;;  %s886_s16 = sand.u32 (!%p825_p8), 1, %s716_s19  }
  0x39   : > { %s489_s25 = sshll.u32 (!%p825_p8), %s886_s16, 2  ;;  %s238_s6 = scalar_lea.sflag (!%p825_p8), [#allocation3], %s886_s16 }
  0x3a   : > { %s241_s9 = scalar_lea.vmem (!%p825_p8), [#allocation2], %s489_s25  ;;  %p986_p12 = scmp.ne.s32.totalorder (!%p825_p8), %s977_s28, 0 }
  0x3d   : > { %699 = dma.done.wait (%p986_p12), %s238_s6, 64  }
  0x3e   : > { %701 = vsyncadd (%p986_p12), %s238_s6, 4294967232 }
  0x3f   : > { %703 = dma.done.wait (%p805_p1), [#allocation6], 256  }
  0x40   : > { %705 = vsyncadd (%p805_p1), [#allocation6], 4294967040  ;;  %vm277_vm0 = vcmask 261120   ;;  %v273_v0 = vld [vmem:[%s241_s9] sm:$0xf]  ;;  %v590_v8 = vld [vmem:[#allocation5 + $0x8] sm:$0xff]  }
  0x41   : > { %v274_v1 = vunpack.c.l.bf16 %v273_v0  ;;  %v738_v9 = vmov 0.0   ;;  %vm739_vm1 = vmmov 0   ;;  %v591_v10 = vld [vmem:[#allocation5] sm:$0xff]   ;;  %v492_v15 = vld [vmem:[%s967_s1] ss:$0 sm:$0xff]  ;;  %s499_s12 = sshll.u32 %s724_s21, 6 }
  0x42   : > { %505 = vmatprep.subr.bf16.mxu0 %v738_v9  ;;  %509 = vmatprep.mubr.msk.bf16.mxu0 %vm739_vm1, %v738_v9  ;;  %v493_v17 = vld [vmem:[%s968_s2] ss:$0 sm:$0xff]  ;;  %s271_s13 = scalar_lea.vmem [#allocation7], %s489_s25  ;;  %vm374_vm2 = vcmask 781312   ;;  %s918_s15 = scalar_lea.hbm %s971_s5, %s499_s12 }
  0x43   : > { %v278_v2 = vsel %vm277_vm0, %v274_v1, 0.0  ;;  %506 = vmatpush3.bf16.msra.mxu0 %v590_v8  ;;  %v494_v21 = vld [vmem:[%s970_s4] ss:$0 sm:$0xff]  ;;  %s391_s14 = sshll.u32 %s271_s13, 4  ;;  %s377_s21 = scalar_lea.sflag [#allocation4], %s886_s16  ;;  %s920_s14 = int_to_ptr.vmem [resolvable:$true] %s391_s14 }
  0x44   : > { %279 = vadd.xlane.f32.xlu0 %v278_v2  ;;  %507 = vmatprep.subr.bf16.mxu0 %v738_v9  ;;  %s648_s8 = scalar_lea.vmem %s920_s14, 64  ;;  %s740_s25 = smov [#allocation7]  }
  0x45   : > { %p649_p1 = scmp.ne.s32.totalorder %s920_s14, %s648_s8  ;;  %s652_s6 = sshll.u32 %s740_s25, 4  ;;  %s653_s6 = int_to_ptr.vmem [resolvable:$false] %s652_s6 }
  0x46   : > { %s654_s9 = scalar_lea.vmem %s653_s6, 128  ;;  %p655_p0 = scmp.lt.s32.totalorder %s920_s14, %s653_s6 }
  0x47   : > { %508 = vmatpush3.bf16.msra.mxu0 %v591_v10  ;;  %p650_p8 = pnand %p649_p1, %p858_p13  ;;  %p656_p2 = scmp.lt.s32.totalorder %s654_s9, %s648_s8 }
  0x49   : > { %p651_p10 = pneg %p650_p8  ;;  %p657_p3 = por %p656_p2, %p655_p0 }
  0x4b   : > { %p658_p5 = pnand %p657_p3, %p651_p10 }
  0xcd   : > { %v280_v3 = vpop.xlane.xlu0 %279 }
  0xce   : > { %v282_v4 = vmul.f32 0.03125, %v280_v3 }
  0xd0   : > { %v283_v5 = vsub.f32 %v274_v1, %v282_v4 }
  0xd2   : > { %v284_v6 = vmul.f32 %v283_v5, %v283_v5 }
  0xd4   : > { %v285_v7 = vsel %vm277_vm0, %v284_v6, 0.0 }
  0xd5   : > { %286 = vadd.xlane.f32.xlu0 %v285_v7 }
 0x15e   : > { %v287_v11 = vpop.xlane.xlu0 %286 }
 0x15f   : > { %v288_v12 = vmul.f32 0.03125, %v287_v11 }
 0x161   : > { %v289_v13 = vadd.f32 1e-05, %v288_v12 }
 0x163   : > { %592 = vrsqrt.f32 %v289_v13 }
 0x170   : > { %v593_v14 = vpop.eup %592 }
 0x171   : > { %v291_v16 = vmul.f32 %v593_v14, %v283_v5 }
 0x173   : > { %v298_v18 = vmul.f32 %v492_v15, %v291_v16 }
 0x175   : > { %v305_v19 = vadd.f32 %v493_v17, %v298_v18 }
 0x177   : > { %v306_v20 = vpack.c.bf16 %v305_v19, %v305_v19 }
 0x179   : > { %510 = vmatmul.mubr.msk.bf16.vlgmr.msra.gmra.mxu0 %vm277_vm0, %v306_v20 }
 0x239   : > { %v367_v22 = vpop.f32.mrf.mxu0 }
 0x23a   : > { %v368_v23 = vadd.f32 %v494_v21, %v367_v22 }
 0x23b   : > { %v511_v24 = vpop.f32.mrf.mxu0 }
 0x23c   : > { %v373_v25 = vpack.c.bf16 %v368_v23, %v368_v23 }
 0x23d   : > { %v370_v26 = vpop.f32.mrf.mxu0 }
 0x23e   : > { %375 = vst.msk [vmem:[%s271_s13] sm:$0xf] %vm374_vm2, %v373_v25 }
 0x23f   : > { %v512_v27 = vpop.f32.mrf.mxu0 }
 0x240   : > { %661 = shalt.err (!%p658_p5)
}
 0x241   : > { %s662_s3 = scalar_lea.hbm %s918_s15, 64  ;;  %s666_s28 = scalar_lea.hbm %s971_s5, 128 }
 0x242   : > { %p663_p7 = scmp.ne.s32.totalorder %s918_s15, %s662_s3  ;;  %p667_p9 = scmp.lt.s32.totalorder %s918_s15, %s971_s5 }
 0x243   : > { %p668_p11 = scmp.lt.s32.totalorder %s666_s28, %s662_s3 }
 0x244   : > { %p664_p6 = pnand %p663_p7, %p858_p13 }
 0x245   : > { %p669_p12 = por %p668_p11, %p667_p9 }
 0x246   : > { %p665_p4 = pneg %p664_p6 }
 0x248   : > { %p670_p1 = pnand %p669_p12, %p665_p4 }
 0x24a   : > { %673 = shalt.err (!%p670_p1)
}
 0x24b   : > { %519 = dma.vmem_to_hbm [thread:$0]  (%p858_p13), %s920_s14, 64, %s918_s15, %s377_s21  }
 0x24c PF: > { %s403_s11 = sand.u32 1, %s712_s18   ;;  %p987_p8 = scmp.ne.s32.totalorder %s978_s29, 0 }
 0x24d   : > { %p988_p10 = scmp.ge.s32.totalorder %s732_s23, 2  ;;  %s404_s12 = scalar_lea.sflag [#allocation4], %s403_s11 }
 0x24f   : > { %p530_p0 = pnand %p988_p10, %p987_p8 }
 0x251   : > { %p531_p2 = pneg %p530_p0 }
 0x253   : > { %707 = dma.done.wait (%p531_p2), %s404_s12, 64  }
 0x254   : > { %709 = vsyncadd (%p531_p2), %s404_s12, 4294967232  ;;  %s22_s23 = sadd.s32 1, %s732_s23   ;;  %s989_s17 = sld [smem:[#allocation11_spill]] }
 0x255   : > { %p19_p3 = scmp.ge.s32.totalorder %s22_s23, 4   ;;  %s990_s18 = smov %s716_s19 }
 0x256   : > { %s991_s19 = smov %s720_s20  ;;  %s992_s20 = smov %s867_s7 }
 0x257   : > { %s993_s21 = smov %s728_s22  ;;  %21 = sbr.rel (!%p19_p3) target bundleno = 9 (0x9), region = 89 }
 0x25a   : > { %s994_s22 = smov %s989_s17 }
 0x25c   :  { %409 = vsyncpa [#allocation3], 1 }
 0x25d   :  { %411 = vsyncpa [#allocation3 + $0x1], 1 }
 0x25e   :  { %412 = vsyncpa [#allocation6], 1 }
 0x25f   :  { %413 = vsyncpa [#allocation4], 1 }
 0x260   :  { %415 = vsyncpa [#allocation4 + $0x1], 1 }

</bundles_post_ra>
